<compile_context>
chip_gen: v5e
topology: v5e:2x2
jax: 0.10.0
libtpu: 0.0.40
codegen_flags: <defaults>
</compile_context>

<pallas_src>
import jax
import jax.numpy as jnp
from jax.experimental import pallas as pl
from jax.experimental.pallas import tpu as pltpu

LANE = 128  # TPU vreg lane width


def _round_up(x, m):
    return (x + m - 1) // m * m


# ------------------------------ Pallas kernel -------------------------------

def _fused_mlp_kernel(x_ref, w1_ref, b1_ref, w2_ref, b2_ref, o_ref):
    # x_ref : (TM, K)    bf16
    # w1_ref: (K, Hp)    bf16   (Hp = hidden padded to 128)
    # b1_ref: (1, Hp)    f32
    # w2_ref: (Hp, Np)   bf16   (Np = out padded to 128)
    # b2_ref: (1, Np)    f32
    # o_ref : (TM, Np)   f32
    h = jnp.dot(x_ref[...], w1_ref[...], preferred_element_type=jnp.float32)
    h = jnp.maximum(h + b1_ref[...], 0.0)                 # f32 epilogue (v5e-safe)
    y = jnp.dot(h.astype(w2_ref.dtype), w2_ref[...],
                preferred_element_type=jnp.float32)
    o_ref[...] = (y + b2_ref[...]).astype(o_ref.dtype)


# ------------------------------ wrapper --------------------------------------

def mlp_forward(params, x, *, tile_m=256):
    """relu(x @ fc1_w.T + fc1_b) @ fc2_w.T + fc2_b  via one fused Pallas kernel.

    params: fc1_w (H, K), fc1_b (H,), fc2_w (N, H), fc2_b (N,)   (PyTorch layout)
    x     : (M, K) float32
    """
    M, K = x.shape
    H = params["fc1_w"].shape[0]          # 28
    N = params["fc2_w"].shape[0]          # 1
    Hp = _round_up(H, LANE)               # 128  (lane-dense hidden)
    Np = _round_up(N, LANE)               # 128  (lane-dense output)

    # M tile: >= 8 sublanes, <= tile_m rows; pad M up to a multiple of it.
    tm = min(tile_m, _round_up(M, 8))
    Mp = _round_up(M, tm)

    f32, bf16 = jnp.float32, jnp.bfloat16

    # Zero-padded, lane-dense operands (done once at trace time).
    xp = jnp.zeros((Mp, K), bf16).at[:M].set(x.astype(bf16))
    w1 = jnp.zeros((K, Hp), bf16).at[:, :H].set(params["fc1_w"].T.astype(bf16))
    b1 = jnp.zeros((1, Hp), f32).at[0, :H].set(params["fc1_b"].astype(f32))
    w2 = jnp.zeros((Hp, Np), bf16).at[:H, :N].set(params["fc2_w"].T.astype(bf16))
    b2 = jnp.zeros((1, Np), f32).at[0, :N].set(params["fc2_b"].astype(f32))

    grid = (Mp // tm,)
    out = pl.pallas_call(
        _fused_mlp_kernel,
        out_shape=jax.ShapeDtypeStruct((Mp, Np), f32),
        grid=grid,
        in_specs=[
            pl.BlockSpec((tm, K), lambda i: (i, 0)),    # x tile (streamed over M)
            pl.BlockSpec((K, Hp), lambda i: (0, 0)),    # fc1 weight (resident)
            pl.BlockSpec((1, Hp), lambda i: (0, 0)),    # fc1 bias
            pl.BlockSpec((Hp, Np), lambda i: (0, 0)),   # fc2 weight (resident)
            pl.BlockSpec((1, Np), lambda i: (0, 0)),    # fc2 bias
        ],
        out_specs=pl.BlockSpec((tm, Np), lambda i: (i, 0)),
        compiler_params=pltpu.CompilerParams(
            dimension_semantics=("parallel",),          # shard M tiles across TCs (v7x)
            vmem_limit_bytes=64 * 1024 * 1024,
        ),
    )(xp, w1, b1, w2, b2)

    return out[:M, :N]                                   # slice off padding


# ------------------------------ init / demo ----------------------------------

def init_params(key, input_dim, hidden=28, out_dim=1):
    """PyTorch nn.Linear-style uniform(-1/sqrt(fan_in), 1/sqrt(fan_in)) init."""
    k1, k2, k3, k4 = jax.random.split(key, 4)
    lim1 = 1.0 / (input_dim ** 0.5)
    lim2 = 1.0 / (hidden ** 0.5)
    return {
        "fc1_w": jax.random.uniform(k1, (hidden, input_dim), jnp.float32, -lim1, lim1),
        "fc1_b": jax.random.uniform(k2, (hidden,), jnp.float32, -lim1, lim1),
        "fc2_w": jax.random.uniform(k3, (out_dim, hidden), jnp.float32, -lim2, lim2),
        "fc2_b": jax.random.uniform(k4, (out_dim,), jnp.float32, -lim2, lim2),
    }


if __name__ == "__main__":
    key = jax.random.PRNGKey(0)
    pkey, xkey = jax.random.split(key)

    input_dim = 32
    batch = 2
    params = init_params(pkey, input_dim)
    x = jax.random.normal(xkey, (batch, input_dim), dtype=jnp.float32)

    out = jax.jit(mlp_forward)(params, x)
    out = jax.block_until_ready(out)

    # Pure-JAX f32 reference (bf16 MXU operands => loose tolerance).
    h_ref = jnp.maximum(x @ params["fc1_w"].T + params["fc1_b"], 0.0)
    ref = h_ref @ params["fc2_w"].T + params["fc2_b"]

    assert out.shape == (batch, 1) and out.dtype == jnp.float32
    assert jnp.allclose(out, ref, atol=5e-2, rtol=5e-2), (out, ref)
    print("KERNEL_OK")
</pallas_src>

<mosaic_0001>
module attributes {stable_mosaic.version = 11 : i64} {
  func.func @_fused_mlp_kernel(%arg0: i32, %arg1: memref<8x32xbf16, #tpu.memory_space<vmem>>, %arg2: memref<32x128xbf16, #tpu.memory_space<vmem>>, %arg3: memref<1x128xf32, #tpu.memory_space<vmem>>, %arg4: memref<128x128xbf16, #tpu.memory_space<vmem>>, %arg5: memref<1x128xf32, #tpu.memory_space<vmem>>, %arg6: memref<8x128xf32, #tpu.memory_space<vmem>>) attributes {dimension_semantics = [#tpu.dimension_semantics<parallel>], iteration_bounds = array<i64: 1>, scalar_prefetch = 0 : i64, scratch_operands = 0 : i64, tpu.core_type = #tpu.core_type<tc>, window_params = [{transform_indices = @transform_0, window_bounds = array<i64: 8, 32>}, {pipeline_mode = #tpu.pipeline_mode<synchronous>, transform_indices = @transform_1, window_bounds = array<i64: 32, 128>}, {pipeline_mode = #tpu.pipeline_mode<synchronous>, transform_indices = @transform_2, window_bounds = array<i64: 1, 128>}, {pipeline_mode = #tpu.pipeline_mode<synchronous>, transform_indices = @transform_3, window_bounds = array<i64: 128, 128>}, {pipeline_mode = #tpu.pipeline_mode<synchronous>, transform_indices = @transform_4, window_bounds = array<i64: 1, 128>}, {transform_indices = @transform_5, window_bounds = array<i64: 8, 128>}]} {
    %c0 = arith.constant 0 : index
    %c0_0 = arith.constant 0 : index
    %0 = vector.load %arg1[%c0, %c0_0] : memref<8x32xbf16, #tpu.memory_space<vmem>>, vector<8x32xbf16>
    %c0_1 = arith.constant 0 : index
    %c0_2 = arith.constant 0 : index
    %1 = vector.load %arg2[%c0_1, %c0_2] : memref<32x128xbf16, #tpu.memory_space<vmem>>, vector<32x128xbf16>
    %cst = arith.constant dense<0.000000e+00> : vector<8x128xf32>
    %2 = tpu.matmul %0, %1, %cst {dimension_numbers = #tpu.dot_dimension_numbers<[1], [0], [0], [1], [0, 0, 1, 1], [], []>} : vector<8x32xbf16>, vector<32x128xbf16>, vector<8x128xf32> -> vector<8x128xf32>
    %c0_3 = arith.constant 0 : index
    %c0_4 = arith.constant 0 : index
    %3 = vector.load %arg3[%c0_3, %c0_4] : memref<1x128xf32, #tpu.memory_space<vmem>>, vector<1x128xf32>
    %4 = vector.broadcast %3 : vector<1x128xf32> to vector<8x128xf32>
    %5 = arith.addf %2, %4 : vector<8x128xf32>
    %cst_5 = arith.constant 0.000000e+00 : f32
    %6 = vector.broadcast %cst_5 : f32 to vector<8x128xf32>
    %7 = arith.maximumf %5, %6 : vector<8x128xf32>
    %8 = arith.truncf %7 : vector<8x128xf32> to vector<8x128xbf16>
    %c0_6 = arith.constant 0 : index
    %c0_7 = arith.constant 0 : index
    %9 = vector.load %arg4[%c0_6, %c0_7] : memref<128x128xbf16, #tpu.memory_space<vmem>>, vector<128x128xbf16>
    %cst_8 = arith.constant dense<0.000000e+00> : vector<8x128xf32>
    %10 = tpu.matmul %8, %9, %cst_8 {dimension_numbers = #tpu.dot_dimension_numbers<[1], [0], [0], [1], [0, 0, 1, 1], [], []>} : vector<8x128xbf16>, vector<128x128xbf16>, vector<8x128xf32> -> vector<8x128xf32>
    %c0_9 = arith.constant 0 : index
    %c0_10 = arith.constant 0 : index
    %11 = vector.load %arg5[%c0_9, %c0_10] : memref<1x128xf32, #tpu.memory_space<vmem>>, vector<1x128xf32>
    %12 = vector.broadcast %11 : vector<1x128xf32> to vector<8x128xf32>
    %13 = arith.addf %10, %12 : vector<8x128xf32>
    %c0_11 = arith.constant 0 : index
    %c0_12 = arith.constant 0 : index
    %14 = vector.load %arg6[%c0_11, %c0_12] : memref<8x128xf32, #tpu.memory_space<vmem>>, vector<8x128xf32>
    tpu.vector_store %arg6[%c0_11, %c0_12], %13 {strides = array<i32>} : memref<8x128xf32, #tpu.memory_space<vmem>>, vector<8x128xf32>,
    return
  }
  func.func @transform_0(%arg0: i32) -> (i32, i32) {
    %c0_i32 = arith.constant 0 : i32
    %c0_i32_0 = arith.constant 0 : i32
    return %arg0, %c0_i32 : i32, i32
  }
  func.func @transform_1(%arg0: i32) -> (i32, i32) {
    %c0_i32 = arith.constant 0 : i32
    %c0_i32_0 = arith.constant 0 : i32
    %c0_i32_1 = arith.constant 0 : i32
    return %c0_i32, %c0_i32_0 : i32, i32
  }
  func.func @transform_2(%arg0: i32) -> (i32, i32) {
    %c0_i32 = arith.constant 0 : i32
    %c0_i32_0 = arith.constant 0 : i32
    %c0_i32_1 = arith.constant 0 : i32
    return %c0_i32, %c0_i32_0 : i32, i32
  }
  func.func @transform_3(%arg0: i32) -> (i32, i32) {
    %c0_i32 = arith.constant 0 : i32
    %c0_i32_0 = arith.constant 0 : i32
    %c0_i32_1 = arith.constant 0 : i32
    return %c0_i32, %c0_i32_0 : i32, i32
  }
  func.func @transform_4(%arg0: i32) -> (i32, i32) {
    %c0_i32 = arith.constant 0 : i32
    %c0_i32_0 = arith.constant 0 : i32
    %c0_i32_1 = arith.constant 0 : i32
    return %c0_i32, %c0_i32_0 : i32, i32
  }
  func.func @transform_5(%arg0: i32) -> (i32, i32) {
    %c0_i32 = arith.constant 0 : i32
    %c0_i32_0 = arith.constant 0 : i32
    return %arg0, %c0_i32 : i32, i32
  }
}

</mosaic_0001>

<bundles_post_ra>
// kernel: mlp_forward.1
= control target key start
LH: loop header
LB: loop body
LE: loop exit
PB: predicated region body
PF: predicated region fallthrough
CT: control target
= control target key end

     0   :  { %vm42_vm0 = vcmask 261120   ;;  %s272_s1 = inlined_call_operand.vmem [shape: bf16[32,128], index: 1, kind: input, shape index: {}]   ;;  %s273_s3 = inlined_call_operand.vmem [shape: bf16[128,128], index: 3, kind: input, shape index: {}]   ;;  %s274_s2 = inlined_call_operand.vmem [shape: f32[1,128], index: 2, kind: input, shape index: {}]   ;;  %s275_s0 = inlined_call_operand.vmem [shape: bf16[8,32], index: 0, kind: input, shape index: {}]   ;;  %s276_s4 = inlined_call_operand.vmem [shape: f32[1,128], index: 4, kind: input, shape index: {}]   ;;  %s277_s5 = inlined_call_operand.vmem [shape: f32[8,128], index: 5, kind: output, shape index: {}]  }
   0x1   :  { %v189_v0 = vld [vmem:[%s272_s1 + $0x8] sm:$0xff]  ;;  %v197_v1 = vld [vmem:[%s273_s3 + $0x38] sm:$0xff]  ;;  %v188_v2 = vld [vmem:[%s272_s1] sm:$0xff] }
   0x2   :  { %52 = vmatpush.bf16.msra.mxu0 %v189_v0  ;;  %129 = vmatpush.bf16.msra.mxu1 %v197_v1  ;;  %v196_v3 = vld [vmem:[%s273_s3 + $0x30] sm:$0xff]  ;;  %v21_v4 = vld [vmem:[%s275_s0] sm:$0xf]  ;;  %v195_v5 = vld [vmem:[%s273_s3 + $0x28] sm:$0xff] }
   0x3   :  { %v194_v6 = vld [vmem:[%s273_s3 + $0x20] sm:$0xff]  ;;  %v193_v7 = vld [vmem:[%s273_s3 + $0x18] sm:$0xff]  ;;  %v192_v8 = vld [vmem:[%s273_s3 + $0x10] sm:$0xff] }
   0x4   :  { %v191_v9 = vld [vmem:[%s273_s3 + $0x8] sm:$0xff]  ;;  %v190_v10 = vld [vmem:[%s273_s3] sm:$0xff] }
   0x5   :  { %v198_v11 = vld [vmem:[%s274_s2] ss:$0 sm:$0xff] }
   0x6   :  { %53 = vmatpush.bf16.msra.mxu0 %v188_v2  ;;  %130 = vmatpush.bf16.msra.mxu1 %v196_v3  ;;  %v199_v17 = vld [vmem:[%s276_s4] ss:$0 sm:$0xff] }
   0x9   :  { %155 = vmatmul.msk.bf16.vlgmr.msra.gmra.mxu0 %vm42_vm0, %v21_v4 }
   0xa   :  { %131 = vmatpush.bf16.msra.mxu1 %v195_v5 }
   0xe   :  { %132 = vmatpush.bf16.msra.mxu1 %v194_v6 }
  0x12   :  { %133 = vmatpush.bf16.msra.mxu1 %v193_v7 }
  0x16   :  { %134 = vmatpush.bf16.msra.mxu1 %v192_v8 }
  0x1a   :  { %135 = vmatpush.bf16.msra.mxu1 %v191_v9 }
  0x1e   :  { %136 = vmatpush.bf16.msra.mxu1 %v190_v10 }
  0x86   :  { %v55_v12 = vpop.f32.mrf.mxu0 }
  0x87   :  { %v56_v13 = vadd.f32 %v198_v11, %v55_v12 }
  0x89   :  { %v59_v14 = vmax.f32 %v56_v13, 0.0 }
  0x8b   :  { %v60_v15 = vpack.c.bf16 %v59_v14, %v59_v14 }
  0x8d   :  { %137 = vmatmul.bf16.vlgmr.msra.gmra.mxu1 %v60_v15 }
  0x8e   :  { %v57_v16 = vpop.f32.mrf.mxu0 }
 0x10a   :  { %v138_v18 = vpop.f32.mrf.mxu1 }
 0x10b   :  { %v139_v19 = vadd.f32 %v199_v17, %v138_v18 }
 0x10d   :  { %142 = vst [vmem:[%s277_s5] sm:$0xff] %v139_v19 }
 0x112   :  { %v140_v20 = vpop.f32.mrf.mxu1 }

</bundles_post_ra>
